<compile_context>
chip_gen: v5e
topology: v5e:2x2
jax: 0.10.0
libtpu: 0.0.40
codegen_flags: <defaults>
</compile_context>

<pallas_src>
import jax
import jax.numpy as jnp
from jax.experimental import pallas as pl
from jax.experimental.pallas import tpu as pltpu


def _round_up(x, m):
    return ((x + m - 1) // m) * m


def _make_kernel(n_embed: int):
    inv_n = 1.0 / n_embed                 # torch.mean denominator (mean and cov)
    inv_nm1 = 1.0 / max(n_embed - 1, 1)   # torch.var unbiased denominator

    def kernel(xr_ref, xi_ref, p_ref, or_ref, oi_ref):
        xr = xr_ref[...]                  # (tR, E)
        xi = xi_ref[...]

        # Two-pass statistics (mean -> center -> var/cov), matching torch numerics.
        mu_r = jnp.sum(xr, axis=-1, keepdims=True) * inv_n
        mu_i = jnp.sum(xi, axis=-1, keepdims=True) * inv_n
        cr = xr - mu_r
        ci = xi - mu_i
        var_r = jnp.sum(cr * cr, axis=-1, keepdims=True) * inv_nm1
        var_i = jnp.sum(ci * ci, axis=-1, keepdims=True) * inv_nm1
        cov = jnp.sum(cr * ci, axis=-1, keepdims=True) * inv_n

        # sqrt_2x2 of the symmetric covariance matrix [[var_r, cov], [cov, var_i]].
        # Exact divides: these are (tR, 1) per-row scalars in an HBM-bound kernel, so
        # the VALU cost is invisible and we keep torch's Inf-on-zero-variance behavior.
        s = jnp.sqrt(var_r * var_i - cov * cov)
        t = jnp.sqrt(var_r + var_i + 2.0 * s)
        cA = (var_r + s) / t
        cB = cov / t
        cD = (var_i + s) / t

        # inv_2x2 of the (symmetric) cov_sqr.
        det = cA * cD - cB * cB
        iA = cD / det
        iB = -cB / det
        iD = cA / det

        # Packed per-embed parameters: rows are (wA, wB, wD, bias_r, bias_i).
        p = p_ref[...]                    # (5, E)
        wA = p[0:1, :]
        wB = p[1:2, :]
        wD = p[2:3, :]
        br = p[3:4, :]
        bi = p[4:5, :]

        # mult_mat = sqrt_2x2(weights_mult) @ inv_2x2(cov_sqr)   (all symmetric).
        mA = wA * iA + wB * iB
        mB = wA * iB + wB * iD
        mC = wB * iA + wD * iB
        mD = wB * iB + wD * iD

        # out = mult_mat @ [cr; ci]  + complex bias.
        or_ref[...] = mA * cr + mB * ci + br
        oi_ref[...] = mC * cr + mD * ci + bi

    return kernel


def _weight_sqrt_planes(weights):
    """Parameter-only math, hoisted out of the kernel.

    weights: float32 [E, 3, 1] -> (wA, wB, wD) planes of shape [E]: the entries of
    sqrt_2x2([[wr^2, cw], [cw, wi^2]]) from the torch forward.
    """
    wr = weights[:, 0, 0]
    wi = weights[:, 1, 0]
    wc = weights[:, 2, 0]
    rvw = wr ** 2
    ivw = wi ** 2
    cw = (jax.nn.sigmoid(wc) - 0.5) * 2.0 * jnp.sqrt(rvw * ivw)
    sw = jnp.sqrt(rvw * ivw - cw * cw)
    tw = jnp.sqrt(rvw + ivw + 2.0 * sw)
    return (rvw + sw) / tw, cw / tw, (ivw + sw) / tw


def complex_layer_norm_planes(xr, xi, weights, bias_r, bias_i):
    """Preferred API: real/imag float32 planes [B, S, E] in, planes [B, S, E] out.

    Keeping planes throughout the surrounding model avoids complex64 split/recombine
    HBM passes entirely.
    """
    B, S, E = xr.shape
    R = B * S

    wA, wB, wD = _weight_sqrt_planes(weights.astype(jnp.float32))
    params = jnp.stack(
        [wA, wB, wD,
         bias_r.reshape(-1).astype(jnp.float32),
         bias_i.reshape(-1).astype(jnp.float32)], axis=0)          # (5, E)

    # Rows are independent -> flatten (B, S).  Free reshape (contiguous); gives one
    # flat "parallel" grid axis that v7x megacore shards evenly, and removes the old
    # wrapper transposes (which cost ~3x HBM traffic on the E<128 path).
    xr2d = xr.reshape(R, E)
    xi2d = xi.reshape(R, E)

    # VMEM tile budget: 4 I/O planes x 2 pipeline buffers + ~4 compiler temporaries
    # (cr, ci, products) of tR x E f32, kept under ~24 MiB.  Explicit 32 MiB scoped
    # limit is safe on every generation (v5e default is only 16 MiB; v7x has 64 MiB
    # physical / 32 MiB scoped default).
    plane_bytes = E * 4
    n_planes = 4 * 2 + 4
    budget = 24 * 1024 * 1024
    tR = max(8, (budget // (n_planes * plane_bytes)) // 8 * 8)
    tR = min(tR, _round_up(R, 8))
    # Keep >= 2 grid steps when there is enough work: megacore balance on v7x and
    # DMA/compute overlap in the software pipeline.
    if R > 8 and pl.cdiv(R, tR) < 2:
        tR = max(8, _round_up(pl.cdiv(R, 2), 8))
    grid = (pl.cdiv(R, tR),)

    x_spec = pl.BlockSpec((tR, E), lambda r: (r, 0))
    p_spec = pl.BlockSpec((5, E), lambda r: (0, 0))
    out_struct = jax.ShapeDtypeStruct((R, E), jnp.float32)

    # TODO(synk): if an xprof trace on v7x shows exposed DMA, add
    # pipeline_mode=pl.Buffered(3) to x_spec (and re-check the VMEM budget).
    out_r, out_i = pl.pallas_call(
        _make_kernel(E),
        out_shape=(out_struct, out_struct),
        grid_spec=pltpu.PrefetchScalarGridSpec(
            num_scalar_prefetch=0,
            grid=grid,
            in_specs=[x_spec, x_spec, p_spec],
            out_specs=(x_spec, x_spec),
        ),
        input_output_aliases={0: 0, 1: 1},
        compiler_params=pltpu.CompilerParams(
            dimension_semantics=("parallel",),
            vmem_limit_bytes=32 * 1024 * 1024),
    )(xr2d, xi2d, params)

    return out_r.reshape(B, S, E), out_i.reshape(B, S, E)


def complex_layer_norm(x, weights, bias):
    """Module-compatible shim: complex64 [B, S, E] -> complex64 [B, S, E].

    NOTE: the real/imag split and recombine below are extra XLA HBM passes; production
    callers should use `complex_layer_norm_planes` and keep float32 planes throughout.
    """
    xr = jnp.real(x).astype(jnp.float32)
    xi = jnp.imag(x).astype(jnp.float32)
    br = jnp.real(bias).reshape(-1).astype(jnp.float32)
    bi = jnp.imag(bias).reshape(-1).astype(jnp.float32)
    out_r, out_i = complex_layer_norm_planes(xr, xi, weights, br, bi)
    return (out_r + 1j * out_i).astype(jnp.complex64)


def _ref_complex_layer_norm(x, weights, bias):
    # Pure-JAX reference mirroring the torch forward (all 2x2 matrices involved are
    # symmetric, so the cat-based construction collapses to elementwise algebra).
    E = x.shape[-1]
    xr, xi = jnp.real(x), jnp.imag(x)
    mu_r = jnp.mean(xr, -1, keepdims=True)
    mu_i = jnp.mean(xi, -1, keepdims=True)
    cr, ci = xr - mu_r, xi - mu_i
    var_r = jnp.sum(cr * cr, -1, keepdims=True) / (E - 1)
    var_i = jnp.sum(ci * ci, -1, keepdims=True) / (E - 1)
    cov = jnp.mean(cr * ci, -1, keepdims=True)
    s = jnp.sqrt(var_r * var_i - cov * cov)
    t = jnp.sqrt(var_r + var_i + 2 * s)
    cA, cB, cD = (var_r + s) / t, cov / t, (var_i + s) / t
    det = cA * cD - cB * cB
    iA, iB, iD = cD / det, -cB / det, cA / det
    wr = weights[:, 0, 0].reshape(1, 1, E)
    wi = weights[:, 1, 0].reshape(1, 1, E)
    wc = weights[:, 2, 0].reshape(1, 1, E)
    rvw, ivw = wr ** 2, wi ** 2
    cw = (jax.nn.sigmoid(wc) - 0.5) * 2 * jnp.sqrt(rvw * ivw)
    sw = jnp.sqrt(rvw * ivw - cw * cw)
    tw = jnp.sqrt(rvw + ivw + 2 * sw)
    wA, wB, wD = (rvw + sw) / tw, cw / tw, (ivw + sw) / tw
    mA = wA * iA + wB * iB
    mB = wA * iB + wB * iD
    mC = wB * iA + wD * iB
    mD = wB * iB + wD * iD
    out_r = mA * cr + mB * ci
    out_i = mC * cr + mD * ci
    return (out_r + 1j * out_i).astype(jnp.complex64) + bias


if __name__ == "__main__":
    B, S, E = 2, 8, 32
    key = jax.random.PRNGKey(0)
    kr, ki = jax.random.split(key)
    xr = jax.random.normal(kr, (B, S, E), dtype=jnp.float32)
    xi = jax.random.normal(ki, (B, S, E), dtype=jnp.float32)
    x = (xr + 1j * xi).astype(jnp.complex64)

    # Parameters exactly as set in ComplexLayerNorm.__init__ (elementwise_affine=True):
    #   weights = Tensor([1, 1, 0]).repeat([E, 1]).unsqueeze(-1)  -> [E, 3, 1]
    #   bias    = zeros([1, 1, E], complex64)
    # self.eps is never used in the torch forward, so it is omitted here.
    weights = jnp.tile(jnp.array([1.0, 1.0, 0.0], dtype=jnp.float32), (E, 1))[..., None]
    bias = jnp.zeros((1, 1, E), dtype=jnp.complex64)

    out = complex_layer_norm(x, weights, bias)
    jax.block_until_ready(out)

    ref = _ref_complex_layer_norm(x, weights, bias)
    assert jnp.allclose(jnp.real(out), jnp.real(ref), atol=1e-5, rtol=1e-5)
    assert jnp.allclose(jnp.imag(out), jnp.imag(ref), atol=1e-5, rtol=1e-5)

    print("KERNEL_OK")
</pallas_src>

<mosaic_0001>
module attributes {stable_mosaic.version = 11 : i64} {
  func.func @kernel(%arg0: i32, %arg1: memref<8x32xf32, #tpu.memory_space<vmem>>, %arg2: memref<8x32xf32, #tpu.memory_space<vmem>>, %arg3: memref<5x32xf32, #tpu.memory_space<vmem>>, %arg4: memref<8x32xf32, #tpu.memory_space<vmem>>, %arg5: memref<8x32xf32, #tpu.memory_space<vmem>>) attributes {dimension_semantics = [#tpu.dimension_semantics<parallel>], iteration_bounds = array<i64: 2>, scalar_prefetch = 0 : i64, scratch_operands = 0 : i64, tpu.core_type = #tpu.core_type<tc>, window_params = [{transform_indices = @transform_0, window_bounds = array<i64: 8, 32>}, {transform_indices = @transform_1, window_bounds = array<i64: 8, 32>}, {pipeline_mode = #tpu.pipeline_mode<synchronous>, transform_indices = @transform_2, window_bounds = array<i64: 5, 32>}, {transform_indices = @transform_3, window_bounds = array<i64: 8, 32>}, {transform_indices = @transform_4, window_bounds = array<i64: 8, 32>}]} {
    %c0 = arith.constant 0 : index
    %c0_0 = arith.constant 0 : index
    %0 = vector.load %arg1[%c0, %c0_0] : memref<8x32xf32, #tpu.memory_space<vmem>>, vector<8x32xf32>
    %c0_1 = arith.constant 0 : index
    %c0_2 = arith.constant 0 : index
    %1 = vector.load %arg2[%c0_1, %c0_2] : memref<8x32xf32, #tpu.memory_space<vmem>>, vector<8x32xf32>
    %cst = arith.constant dense<0.000000e+00> : vector<8xf32>
    %2 = vector.multi_reduction <add>, %0, %cst [1] : vector<8x32xf32> to vector<8xf32>
    %3 = vector.shape_cast %2 : vector<8xf32> to vector<8x1xf32>
    %cst_3 = arith.constant 3.125000e-02 : f32
    %4 = vector.broadcast %cst_3 : f32 to vector<8x1xf32>
    %5 = arith.mulf %3, %4 : vector<8x1xf32>
    %cst_4 = arith.constant dense<0.000000e+00> : vector<8xf32>
    %6 = vector.multi_reduction <add>, %1, %cst_4 [1] : vector<8x32xf32> to vector<8xf32>
    %7 = vector.shape_cast %6 : vector<8xf32> to vector<8x1xf32>
    %cst_5 = arith.constant 3.125000e-02 : f32
    %8 = vector.broadcast %cst_5 : f32 to vector<8x1xf32>
    %9 = arith.mulf %7, %8 : vector<8x1xf32>
    %10 = vector.broadcast %5 : vector<8x1xf32> to vector<8x32xf32>
    %11 = arith.subf %0, %10 : vector<8x32xf32>
    %12 = vector.broadcast %9 : vector<8x1xf32> to vector<8x32xf32>
    %13 = arith.subf %1, %12 : vector<8x32xf32>
    %14 = arith.mulf %11, %11 : vector<8x32xf32>
    %cst_6 = arith.constant dense<0.000000e+00> : vector<8xf32>
    %15 = vector.multi_reduction <add>, %14, %cst_6 [1] : vector<8x32xf32> to vector<8xf32>
    %16 = vector.shape_cast %15 : vector<8xf32> to vector<8x1xf32>
    %cst_7 = arith.constant 0.0322580636 : f32
    %17 = vector.broadcast %cst_7 : f32 to vector<8x1xf32>
    %18 = arith.mulf %16, %17 : vector<8x1xf32>
    %19 = arith.mulf %13, %13 : vector<8x32xf32>
    %cst_8 = arith.constant dense<0.000000e+00> : vector<8xf32>
    %20 = vector.multi_reduction <add>, %19, %cst_8 [1] : vector<8x32xf32> to vector<8xf32>
    %21 = vector.shape_cast %20 : vector<8xf32> to vector<8x1xf32>
    %cst_9 = arith.constant 0.0322580636 : f32
    %22 = vector.broadcast %cst_9 : f32 to vector<8x1xf32>
    %23 = arith.mulf %21, %22 : vector<8x1xf32>
    %24 = arith.mulf %11, %13 : vector<8x32xf32>
    %cst_10 = arith.constant dense<0.000000e+00> : vector<8xf32>
    %25 = vector.multi_reduction <add>, %24, %cst_10 [1] : vector<8x32xf32> to vector<8xf32>
    %26 = vector.shape_cast %25 : vector<8xf32> to vector<8x1xf32>
    %cst_11 = arith.constant 3.125000e-02 : f32
    %27 = vector.broadcast %cst_11 : f32 to vector<8x1xf32>
    %28 = arith.mulf %26, %27 : vector<8x1xf32>
    %29 = arith.mulf %18, %23 : vector<8x1xf32>
    %30 = arith.mulf %28, %28 : vector<8x1xf32>
    %31 = arith.subf %29, %30 : vector<8x1xf32>
    %32 = math.sqrt %31 : vector<8x1xf32>
    %33 = arith.addf %18, %23 : vector<8x1xf32>
    %cst_12 = arith.constant 2.000000e+00 : f32
    %34 = vector.broadcast %cst_12 : f32 to vector<8x1xf32>
    %35 = arith.mulf %34, %32 : vector<8x1xf32>
    %36 = arith.addf %33, %35 : vector<8x1xf32>
    %37 = math.sqrt %36 : vector<8x1xf32>
    %38 = arith.addf %18, %32 : vector<8x1xf32>
    %39 = arith.divf %38, %37 : vector<8x1xf32>
    %40 = arith.divf %28, %37 : vector<8x1xf32>
    %41 = arith.addf %23, %32 : vector<8x1xf32>
    %42 = arith.divf %41, %37 : vector<8x1xf32>
    %43 = arith.mulf %39, %42 : vector<8x1xf32>
    %44 = arith.mulf %40, %40 : vector<8x1xf32>
    %45 = arith.subf %43, %44 : vector<8x1xf32>
    %46 = arith.divf %42, %45 : vector<8x1xf32>
    %cst_13 = arith.constant 0.000000e+00 : f32
    %47 = vector.broadcast %cst_13 : f32 to vector<8x1xf32>
    %48 = arith.subf %47, %40 : vector<8x1xf32>
    %49 = arith.divf %48, %45 : vector<8x1xf32>
    %50 = arith.divf %39, %45 : vector<8x1xf32>
    %c0_14 = arith.constant 0 : index
    %c0_15 = arith.constant 0 : index
    %51 = vector.load %arg3[%c0_14, %c0_15] : memref<5x32xf32, #tpu.memory_space<vmem>>, vector<5x32xf32>
    %52 = vector.extract_strided_slice %51 {offsets = [0, 0], sizes = [1, 32], strides = [1, 1]} : vector<5x32xf32> to vector<1x32xf32>
    %53 = vector.extract_strided_slice %51 {offsets = [1, 0], sizes = [1, 32], strides = [1, 1]} : vector<5x32xf32> to vector<1x32xf32>
    %54 = vector.extract_strided_slice %51 {offsets = [2, 0], sizes = [1, 32], strides = [1, 1]} : vector<5x32xf32> to vector<1x32xf32>
    %55 = vector.extract_strided_slice %51 {offsets = [3, 0], sizes = [1, 32], strides = [1, 1]} : vector<5x32xf32> to vector<1x32xf32>
    %56 = vector.extract_strided_slice %51 {offsets = [4, 0], sizes = [1, 32], strides = [1, 1]} : vector<5x32xf32> to vector<1x32xf32>
    %57 = vector.broadcast %52 : vector<1x32xf32> to vector<8x32xf32>
    %58 = vector.broadcast %46 : vector<8x1xf32> to vector<8x32xf32>
    %59 = arith.mulf %57, %58 : vector<8x32xf32>
    %60 = vector.broadcast %53 : vector<1x32xf32> to vector<8x32xf32>
    %61 = vector.broadcast %49 : vector<8x1xf32> to vector<8x32xf32>
    %62 = arith.mulf %60, %61 : vector<8x32xf32>
    %63 = arith.addf %59, %62 : vector<8x32xf32>
    %64 = vector.broadcast %52 : vector<1x32xf32> to vector<8x32xf32>
    %65 = vector.broadcast %49 : vector<8x1xf32> to vector<8x32xf32>
    %66 = arith.mulf %64, %65 : vector<8x32xf32>
    %67 = vector.broadcast %53 : vector<1x32xf32> to vector<8x32xf32>
    %68 = vector.broadcast %50 : vector<8x1xf32> to vector<8x32xf32>
    %69 = arith.mulf %67, %68 : vector<8x32xf32>
    %70 = arith.addf %66, %69 : vector<8x32xf32>
    %71 = vector.broadcast %53 : vector<1x32xf32> to vector<8x32xf32>
    %72 = vector.broadcast %46 : vector<8x1xf32> to vector<8x32xf32>
    %73 = arith.mulf %71, %72 : vector<8x32xf32>
    %74 = vector.broadcast %54 : vector<1x32xf32> to vector<8x32xf32>
    %75 = vector.broadcast %49 : vector<8x1xf32> to vector<8x32xf32>
    %76 = arith.mulf %74, %75 : vector<8x32xf32>
    %77 = arith.addf %73, %76 : vector<8x32xf32>
    %78 = vector.broadcast %53 : vector<1x32xf32> to vector<8x32xf32>
    %79 = vector.broadcast %49 : vector<8x1xf32> to vector<8x32xf32>
    %80 = arith.mulf %78, %79 : vector<8x32xf32>
    %81 = vector.broadcast %54 : vector<1x32xf32> to vector<8x32xf32>
    %82 = vector.broadcast %50 : vector<8x1xf32> to vector<8x32xf32>
    %83 = arith.mulf %81, %82 : vector<8x32xf32>
    %84 = arith.addf %80, %83 : vector<8x32xf32>
    %85 = arith.mulf %63, %11 : vector<8x32xf32>
    %86 = arith.mulf %70, %13 : vector<8x32xf32>
    %87 = arith.addf %85, %86 : vector<8x32xf32>
    %88 = vector.broadcast %55 : vector<1x32xf32> to vector<8x32xf32>
    %89 = arith.addf %87, %88 : vector<8x32xf32>
    %c0_16 = arith.constant 0 : index
    %c0_17 = arith.constant 0 : index
    %90 = vector.load %arg4[%c0_16, %c0_17] : memref<8x32xf32, #tpu.memory_space<vmem>>, vector<8x32xf32>
    tpu.vector_store %arg4[%c0_16, %c0_17], %89 {strides = array<i32>} : memref<8x32xf32, #tpu.memory_space<vmem>>, vector<8x32xf32>,
    %91 = arith.mulf %77, %11 : vector<8x32xf32>
    %92 = arith.mulf %84, %13 : vector<8x32xf32>
    %93 = arith.addf %91, %92 : vector<8x32xf32>
    %94 = vector.broadcast %56 : vector<1x32xf32> to vector<8x32xf32>
    %95 = arith.addf %93, %94 : vector<8x32xf32>
    %c0_18 = arith.constant 0 : index
    %c0_19 = arith.constant 0 : index
    %96 = vector.load %arg5[%c0_18, %c0_19] : memref<8x32xf32, #tpu.memory_space<vmem>>, vector<8x32xf32>
    tpu.vector_store %arg5[%c0_18, %c0_19], %95 {strides = array<i32>} : memref<8x32xf32, #tpu.memory_space<vmem>>, vector<8x32xf32>,
    return
  }
  func.func @transform_0(%arg0: i32) -> (i32, i32) {
    %c0_i32 = arith.constant 0 : i32
    %c0_i32_0 = arith.constant 0 : i32
    return %arg0, %c0_i32 : i32, i32
  }
  func.func @transform_1(%arg0: i32) -> (i32, i32) {
    %c0_i32 = arith.constant 0 : i32
    %c0_i32_0 = arith.constant 0 : i32
    return %arg0, %c0_i32 : i32, i32
  }
  func.func @transform_2(%arg0: i32) -> (i32, i32) {
    %c0_i32 = arith.constant 0 : i32
    %c0_i32_0 = arith.constant 0 : i32
    %c0_i32_1 = arith.constant 0 : i32
    return %c0_i32, %c0_i32_0 : i32, i32
  }
  func.func @transform_3(%arg0: i32) -> (i32, i32) {
    %c0_i32 = arith.constant 0 : i32
    %c0_i32_0 = arith.constant 0 : i32
    return %arg0, %c0_i32 : i32, i32
  }
  func.func @transform_4(%arg0: i32) -> (i32, i32) {
    %c0_i32 = arith.constant 0 : i32
    %c0_i32_0 = arith.constant 0 : i32
    return %arg0, %c0_i32 : i32, i32
  }
}

</mosaic_0001>

<bundles_post_ra>
// kernel: tpu_custom_call.1
= control target key start
LH: loop header
LB: loop body
LE: loop exit
PB: predicated region body
PF: predicated region fallthrough
CT: control target
= control target key end

     0   :  { %s1038_s0 = inlined_call_operand.hbm [shape: f32[16,32], index: 0, kind: input, shape index: {}, may-alias: {0,3}]   ;;  %s1039_s1 = inlined_call_operand.hbm [shape: f32[16,32], index: 1, kind: input, shape index: {}, may-alias: {1,4}]   ;;  %s1040_s2 = inlined_call_operand.vmem [shape: f32[5,32], index: 2, kind: input, shape index: {}]   ;;  %s1041_s3 = inlined_call_operand.hbm [shape: f32[16,32], index: 3, kind: output, shape index: {0}, may-alias: {0,3}]   ;;  %s1042_s4 = inlined_call_operand.hbm [shape: f32[16,32], index: 4, kind: output, shape index: {1}, may-alias: {1,4}]  }
   0x1   :  { %1043 = sst [smem:[#allocation14_spill]] %s1038_s0 }
   0x2   :  { %10 = vsyncpa [#allocation3], 0 }
   0x3   :  { %12 = vsyncpa [#allocation3 + $0x1], 0 }
   0x4   :  { %13 = vsyncpa [#allocation6], 0 }
   0x5   :  { %15 = vsyncpa [#allocation6 + $0x1], 0 }
   0x6   :  { %16 = vsyncpa [#allocation4], 0 }
   0x7   :  { %18 = vsyncpa [#allocation4 + $0x1], 0 }
   0x8   :  { %19 = vsyncpa [#allocation9], 0 }
   0x9   :  { %21 = vsyncpa [#allocation9 + $0x1], 0  ;;  %s822_s15 = smov 0   ;;  %s824_s16 = smov 0  }
   0xa   :  { %s826_s17 = smov 0   ;;  %s828_s18 = smov 0  }
   0xb LB: > { %s843_s19 = sadd.s32 4294967295, %s795_s18   ;;  %s551_s20 = sadd.s32 4294967294, %s795_s18   ;;  %s795_s18 = sphi %s828_s18, %s1055_s18   ;;  %s791_s17 = sphi %s826_s17, %s1054_s17   ;;  %s787_s16 = sphi %s824_s16, %s1053_s16   ;;  %s783_s15 = sphi %s822_s15, %s1052_s15  }
   0xc   : > { %s847_s21 = sadd.s32 1, %s795_s18   ;;  %s34_s22 = sadd.s32 1, %s791_s17 }
   0xd   : > { %s31_s23 = ssub.s32 %s795_s18, %s847_s21  ;;  %p41_p0 = scmp.ne.s32.totalorder %s791_s17, %s787_s16 }
   0xe   : > { %p32_p1 = scmp.eq.s32.totalorder %s31_s23, 0  ;;  %p42_p2 = scmp.eq.s32.totalorder %s795_s18, 0 }
   0xf   : > { %p47_p3 = scmp.ne.s32.totalorder %s787_s16, %s783_s15  ;;  %p48_p4 = scmp.eq.s32.totalorder %s843_s19, 0 }
  0x10   : > { %s859_s24 = scalar_select %p32_p1, %s791_s17, %s34_s22  }
  0x11   : > { %p861_p5 = por %p42_p2, %p41_p0  ;;  %p865_p6 = por %p48_p4, %p47_p3 }
  0x12   : > { %p118_p7 = scmp.eq.s32.totalorder %s843_s19, 1  ;;  %p124_p8 = scmp.eq.s32.totalorder %s551_s20, 1 }
  0x13   : > { %p591_p10 = scmp.lt.s32.totalorder %s795_s18, 2  ;;  %s881_s29 = sand.u32 1, %s791_s17  }
  0x14   : > { %p872_p11 = por %p118_p7, %p41_p0  ;;  %p876_p12 = por %p124_p8, %p47_p3 }
  0x15   : > { %s555_s30 = sshll.u32 %s795_s18, 3  ;;  %s554_s5 = sshll.u32 %s881_s29, 3 }
  0x16   : > { %s1048_s0 = sld [smem:[#allocation14_spill]]  ;;  %s177_s10 = scalar_lea.vmem [#allocation2], %s554_s5 }
  0x17   : > { %s185_s11 = sshll.u32 %s177_s10, 4  ;;  %p890_p13 = pnand %p591_p10, %p861_p5  ;;  %s186_s11 = int_to_ptr.vmem [resolvable:$true] %s185_s11 }
  0x18   : > { %p558_p0 = scmp.ge.s32.totalorder %s795_s18, 1  ;;  %p209_p1 = scmp.lt.s32.totalorder %s795_s18, 3 }
  0x19   : > { %s174_s13 = scalar_lea.sflag [#allocation3], %s881_s29  ;;  %p637_p3 = pneg %p890_p13 }
  0x1c   : > { %s181_s8 = scalar_lea.hbm %s1048_s0, %s555_s30  ;;  %s640_s25 = scalar_lea.hbm %s1048_s0, 16 }
  0x1d   : > { %s183_s9 = sshll.u32 %s181_s8, 4  ;;  %s184_s9 = int_to_ptr.hbm [resolvable:$true] %s183_s9 }
  0x1e   : > { %s633_s14 = sshra.s32 %s184_s9, 4  ;;  %s634_s14 = int_to_ptr.hbm [resolvable:$true] %s633_s14 }
  0x1f   : > { %s635_s20 = scalar_lea.hbm %s634_s14, 8  ;;  %p641_p5 = scmp.lt.s32.totalorder %s634_s14, %s1048_s0 }
  0x20   : > { %p636_p2 = scmp.ne.s32.totalorder %s634_s14, %s635_s20  ;;  %p642_p8 = scmp.lt.s32.totalorder %s640_s25, %s635_s20 }
  0x22   : > { %p638_p4 = pnand %p637_p3, %p636_p2  ;;  %p643_p10 = por %p642_p8, %p641_p5 }
  0x24   : > { %p639_p7 = pneg %p638_p4 }
  0x26   : > { %p644_p9 = pnand %p643_p10, %p639_p7 }
  0x28   : > { %647 = shalt.err (!%p644_p9)
}
  0x29   : > { %580 = dma.hbm_to_vmem [thread:$0]  (!%p890_p13), %s184_s9, 128, %s186_s11, %s174_s13  }
  0x2a   : > { %p914_p2 = pnand %p558_p0, %p209_p1  ;;  %s200_s14 = scalar_lea.hbm %s1039_s1, %s555_s30 }
  0x2b   : > { %s202_s20 = sshll.u32 %s200_s14, 4  ;;  %s196_s23 = scalar_lea.vmem [#allocation5], %s554_s5  ;;  %s203_s20 = int_to_ptr.hbm [resolvable:$true] %s202_s20 }
  0x2c   : > { %s204_s25 = sshll.u32 %s196_s23, 4  ;;  %s193_s6 = scalar_lea.sflag [#allocation6], %s881_s29  ;;  %s205_s25 = int_to_ptr.vmem [resolvable:$true] %s204_s25 }
  0x2d   : > { %s663_s7 = sshra.s32 %s203_s20, 4  ;;  %s670_s13 = scalar_lea.hbm %s1039_s1, 16  ;;  %s664_s7 = int_to_ptr.hbm [resolvable:$true] %s663_s7 }
  0x2e   : > { %s665_s0 = scalar_lea.hbm %s664_s7, 8  ;;  %p671_p4 = scmp.lt.s32.totalorder %s664_s7, %s1039_s1 }
  0x2f   : > { %p666_p9 = scmp.ne.s32.totalorder %s664_s7, %s665_s0  ;;  %p672_p7 = scmp.lt.s32.totalorder %s670_s13, %s665_s0 }
  0x31   : > { %p668_p0 = pnand %p666_p9, %p637_p3  ;;  %p673_p5 = por %p672_p7, %p671_p4 }
  0x33   : > { %p669_p1 = pneg %p668_p0 }
  0x35   : > { %p674_p8 = pnand %p673_p5, %p669_p1 }
  0x37   : > { %677 = shalt.err (!%p674_p8)
}
  0x38   : > { %583 = dma.hbm_to_vmem [thread:$0]  (!%p890_p13), %s203_s20, 128, %s205_s25, %s193_s6  }
  0x39   : > { %213 = sbr.rel (%p914_p2) target bundleno = 433 (0x1b1), region = 32  ;;  %s936_s29 = sand.u32 (!%p914_p2), 1, %s787_s16  }
  0x3a   : > { %s939_s5 = sshll.u32 (!%p914_p2), %s936_s29, 3  ;;  %s216_s22 = scalar_lea.sflag (!%p914_p2), [#allocation3], %s936_s29 }
  0x3b   : > { %s219_s0 = scalar_lea.vmem (!%p914_p2), [#allocation2], %s939_s5 }
  0x3e   : > { %766 = dma.done.wait (%p865_p6), %s216_s22, 128  }
  0x3f   : > { %768 = vsyncadd (%p865_p6), %s216_s22, 4294967168  ;;  %s226_s12 = scalar_lea.sflag [#allocation6], %s936_s29  ;;  %s229_s8 = scalar_lea.vmem [#allocation5], %s939_s5 }
  0x40   : > { %770 = dma.done.wait (%p865_p6), %s226_s12, 128  }
  0x41   : > { %772 = vsyncadd (%p865_p6), %s226_s12, 4294967168  ;;  %vm267_vm0 = vcmask 261120   ;;  %v265_v0 = vld [vmem:[%s219_s0] sm:$0xff]  ;;  %v266_v2 = vld [vmem:[%s229_s8] sm:$0xff]  ;;  %s565_s20 = sshll.u32 %s843_s19, 3  ;;  %s257_s11 = scalar_lea.vmem [#allocation7], %s939_s5 }
  0x42   : > { %v268_v1 = vsel %vm267_vm0, %v265_v0, 0.0  ;;  %v272_v3 = vsel %vm267_vm0, %v266_v2, 0.0  ;;  %s406_s6 = scalar_lea.hbm %s1041_s3, %s565_s20  ;;  %s420_s19 = scalar_lea.hbm %s1042_s4, %s565_s20 }
  0x43   : > { %269 = vadd.xlane.f32.xlu0 %v268_v1  ;;  %s981_s13 = sshll.u32 %s257_s11, 4  ;;  %s410_s10 = sshll.u32 %s406_s6, 4  ;;  %s409_s13 = int_to_ptr.vmem [resolvable:$true] %s981_s13  ;;  %s411_s10 = int_to_ptr.hbm [resolvable:$true] %s410_s10 }
  0x44   : > { %s264_s30 = scalar_lea.vmem [#allocation8], %s939_s5  ;;  %s424_s0 = sshll.u32 %s420_s19, 4  ;;  %s990_s0 = int_to_ptr.hbm [resolvable:$true] %s424_s0 }
  0x45   : > { %s986_s22 = sshll.u32 %s264_s30, 4  ;;  %s391_s12 = scalar_lea.sflag [#allocation4], %s936_s29  ;;  %s423_s22 = int_to_ptr.vmem [resolvable:$true] %s986_s22 }
  0x46   : > { %s707_s8 = sshra.s32 %s411_s10, 4  ;;  %s713_s20 = scalar_lea.hbm %s1041_s3, 16  ;;  %s708_s8 = int_to_ptr.hbm [resolvable:$true] %s707_s8 }
  0x47   : > { %s709_s26 = scalar_lea.hbm %s708_s8, 8  ;;  %p714_p10 = scmp.lt.s32.totalorder %s708_s8, %s1041_s3 }
  0x48   : > { %p710_p6 = scmp.ne.s32.totalorder %s708_s8, %s709_s26  ;;  %p715_p2 = scmp.lt.s32.totalorder %s713_s20, %s709_s26 }
  0x4a   : > { %p711_p13 = pnand %p710_p6, %p872_p11  ;;  %p716_p9 = por %p715_p2, %p714_p10 }
  0x4b   : > { %273 = vadd.xlane.f32.xlu0 %v272_v3 }
  0x4c   : > { %p712_p3 = pneg %p711_p13 }
  0x4e   : > { %p717_p0 = pnand %p716_p9, %p712_p3 }
  0xb6   : > { %v270_v4 = vpop.xlane.xlu0 %269 }
  0xb7   : > { %v271_v5 = vmul.f32 0.03125, %v270_v4 }
  0xb9   : > { %v955_v6 = vsub.f32 %v265_v0, %v271_v5 }
  0xbb   : > { %v278_v7 = vmul.f32 %v955_v6, %v955_v6 }
  0xbd   : > { %v279_v8 = vsel %vm267_vm0, %v278_v7, 0.0  ;;  %v363_v7 = vld [vmem:[%s1040_s2] sm:$0x1f] }
  0xbe   : > { %280 = vadd.xlane.f32.xlu1 %v279_v8  ;;  %v274_v9 = vpop.xlane.xlu0 %273 }
  0xbf   : > { %v275_v10 = vmul.f32 0.03125, %v274_v9 }
  0xc1   : > { %v960_v11 = vsub.f32 %v266_v2, %v275_v10 }
  0xc3   : > { %v288_v12 = vmul.f32 %v960_v11, %v955_v6  ;;  %v283_v13 = vmul.f32 %v960_v11, %v960_v11 }
  0xc5   : > { %v289_v14 = vsel %vm267_vm0, %v288_v12, 0.0  ;;  %v284_v15 = vsel %vm267_vm0, %v283_v13, 0.0  ;;  %v364_v12 = vperm.slane %v363_v7, 0 }
  0xc6   : > { %290 = vadd.xlane.f32.xlu2 %v289_v14  ;;  %285 = vadd.xlane.f32.xlu1 %v284_v15  ;;  %v366_v14 = vperm.slane %v363_v7, 1 }
 0x131   : > { %v281_v16 = vpop.xlane.xlu1 %280 }
 0x132   : > { %v282_v19 = vmul.f32 0.032258064, %v281_v16 }
 0x139   : > { %v291_v17 = vpop.xlane.xlu2 %290  ;;  %v286_v18 = vpop.xlane.xlu1 %285 }
 0x13a   : > { %v292_v20 = vmul.f32 0.03125, %v291_v17  ;;  %v287_v21 = vmul.f32 0.032258064, %v286_v18  ;;  %v373_v17 = vperm.slane %v363_v7, 2 }
 0x13c   : > { %v294_v22 = vmul.f32 %v292_v20, %v292_v20  ;;  %v293_v23 = vmul.f32 %v287_v21, %v282_v19  ;;  %v308_v35 = vadd.f32 %v287_v21, %v282_v19 }
 0x13e   : > { %v295_v24 = vsub.f32 %v293_v23, %v294_v22 }
 0x140   : > { %625 = vrsqrt.f32 %v295_v24  ;;  %vm303_vm1 = vcmp.eq.f32.partialorder %v295_v24, inf  ;;  %v306_v32 = vand.u32 2147483648, %v295_v24  ;;  %vm305_vm2 = vcmp.eq.f32.partialorder %v295_v24, 0.0 }
 0x146   : > { %v626_v25 = vpop.eup %625 }
 0x147   : > { %v297_v26 = vmul.f32 %v626_v25, %v295_v24 }
 0x149   : > { %v298_v27 = vmul.f32 %v626_v25, %v297_v26 }
 0x14b   : > { %v299_v28 = vmul.f32 0.5, %v298_v27 }
 0x14d   : > { %v300_v29 = vsub.f32 1.5, %v299_v28 }
 0x14f   : > { %v301_v30 = vmul.f32 %v626_v25, %v300_v29 }
 0x151   : > { %v302_v31 = vmul.f32 %v301_v30, %v295_v24 }
 0x153   : > { %v304_v33 = vsel %vm303_vm1, %v295_v24, %v302_v31 }
 0x154   : > { %v307_v34 = vsel %vm305_vm2, %v306_v32, %v304_v33 }
 0x155   : > { %v309_v36 = vmul.f32 2.0, %v307_v34  ;;  %v323_v56 = vadd.f32 %v307_v34, %v282_v19  ;;  %v340_v58 = vadd.f32 %v307_v34, %v287_v21 }
 0x157   : > { %v310_v37 = vadd.f32 %v309_v36, %v308_v35  ;;  %v381_v35 = vperm.slane %v363_v7, 3 }
 0x159   : > { %627 = vrsqrt.f32 %v310_v37  ;;  %vm318_vm3 = vcmp.eq.f32.partialorder %v310_v37, inf  ;;  %v321_v45 = vand.u32 2147483648, %v310_v37  ;;  %vm320_vm4 = vcmp.eq.f32.partialorder %v310_v37, 0.0 }
 0x15f   : > { %v628_v38 = vpop.eup %627 }
 0x160   : > { %v312_v39 = vmul.f32 %v628_v38, %v310_v37 }
 0x162   : > { %v313_v40 = vmul.f32 %v628_v38, %v312_v39 }
 0x164   : > { %v314_v41 = vmul.f32 0.5, %v313_v40 }
 0x166   : > { %v315_v42 = vsub.f32 1.5, %v314_v41 }
 0x168   : > { %v316_v43 = vmul.f32 %v628_v38, %v315_v42  ;;  %v387_v38 = vperm.slane %v363_v7, 4 }
 0x16a   : > { %v317_v44 = vmul.f32 %v316_v43, %v310_v37 }
 0x16c   : > { %v319_v46 = vsel %vm318_vm3, %v310_v37, %v317_v44 }
 0x16d   : > { %v322_v47 = vsel %vm320_vm4, %v321_v45, %v319_v46 }
 0x16e   : > { %629 = vrcp.f32 %v322_v47  ;;  %v335_v51 = vand.u32 2147483648, %v322_v47  ;;  %v333_v53 = vand.u32 2147483647, %v322_v47  ;;  %vm329_vm6 = vweird.f32 %v322_v47 }
 0x170   : > { %v336_v55 = vor.u32 1.1754944e-38, %v335_v51  ;;  %vm334_vm8 = vcmp.eq.f32.partialorder %v333_v53, 8.507059e+37 }
 0x174   : > { %v630_v48 = vpop.eup %629 }
 0x175   : > { %v325_v49 = vmul.f32 %v630_v48, %v322_v47  ;;  %vm330_vm5 = vweird.f32 %v630_v48 }
 0x176   : > { %vm331_vm7 = vmor %vm329_vm6, %vm330_vm5 }
 0x177   : > { %v326_v50 = vsub.f32 1.0, %v325_v49 }
 0x179   : > { %v327_v52 = vmul.f32 %v630_v48, %v326_v50 }
 0x17b   : > { %v328_v54 = vadd.f32 %v630_v48, %v327_v52 }
 0x17d   : > { %v332_v57 = vsel %vm331_vm7, %v630_v48, %v328_v54 }
 0x17e   : > { %v337_v59 = vsel %vm334_vm8, %v336_v55, %v332_v57 }
 0x17f   : > { %v338_v60 = vmul.f32 %v337_v59, %v323_v56  ;;  %v339_v61 = vmul.f32 %v337_v59, %v292_v20  ;;  %v341_v62 = vmul.f32 %v340_v58, %v337_v59 }
 0x181   : > { %v342_v63 = vmul.f32 %v341_v62, %v338_v60  ;;  %v343_v0 = vmul.f32 %v339_v61, %v339_v61  ;;  %v360_v16 = vsub.f32 0.0, %v339_v61 }
 0x183   : > { %v344_v1 = vsub.f32 %v342_v63, %v343_v0 }
 0x185   : > { %631 = vrcp.f32 %v344_v1  ;;  %v356_v5 = vand.u32 2147483648, %v344_v1  ;;  %v354_v9 = vand.u32 2147483647, %v344_v1  ;;  %vm350_vm10 = vweird.f32 %v344_v1 }
 0x187   : > { %v357_v13 = vor.u32 1.1754944e-38, %v356_v5  ;;  %vm355_vm12 = vcmp.eq.f32.partialorder %v354_v9, 8.507059e+37 }
 0x18b   : > { %v632_v2 = vpop.eup %631 }
 0x18c   : > { %v346_v3 = vmul.f32 %v632_v2, %v344_v1  ;;  %vm351_vm9 = vweird.f32 %v632_v2 }
 0x18d   : > { %vm352_vm11 = vmor %vm350_vm10, %vm351_vm9 }
 0x18e   : > { %v347_v4 = vsub.f32 1.0, %v346_v3 }
 0x190   : > { %v348_v8 = vmul.f32 %v632_v2, %v347_v4 }
 0x192   : > { %v349_v10 = vadd.f32 %v632_v2, %v348_v8 }
 0x194   : > { %v353_v15 = vsel %vm352_vm11, %v632_v2, %v349_v10 }
 0x195   : > { %v358_v18 = vsel %vm355_vm12, %v357_v13, %v353_v15 }
 0x196   : > { %v359_v19 = vmul.f32 %v358_v18, %v341_v62  ;;  %v361_v20 = vmul.f32 %v360_v16, %v358_v18  ;;  %v362_v21 = vmul.f32 %v358_v18, %v338_v60 }
 0x198   : > { %v365_v22 = vmul.f32 %v364_v12, %v359_v19  ;;  %v367_v23 = vmul.f32 %v366_v14, %v361_v20  ;;  %v369_v24 = vmul.f32 %v364_v12, %v361_v20  ;;  %v370_v25 = vmul.f32 %v366_v14, %v362_v21 }
 0x199   : > { %v372_v26 = vmul.f32 %v366_v14, %v359_v19  ;;  %v374_v27 = vmul.f32 %v373_v17, %v361_v20  ;;  %v376_v28 = vmul.f32 %v373_v17, %v362_v21 }
 0x19a   : > { %v368_v29 = vadd.f32 %v367_v23, %v365_v22  ;;  %v371_v30 = vadd.f32 %v370_v25, %v369_v24 }
 0x19b   : > { %v375_v31 = vadd.f32 %v374_v27, %v372_v26  ;;  %v377_v32 = vadd.f32 %v376_v28, %v367_v23 }
 0x19c   : > { %v378_v33 = vmul.f32 %v368_v29, %v955_v6  ;;  %v379_v34 = vmul.f32 %v371_v30, %v960_v11 }
 0x19d   : > { %v384_v36 = vmul.f32 %v375_v31, %v955_v6  ;;  %v385_v37 = vmul.f32 %v377_v32, %v960_v11 }
 0x19e   : > { %v380_v39 = vadd.f32 %v379_v34, %v378_v33 }
 0x19f   : > { %v386_v40 = vadd.f32 %v385_v37, %v384_v36 }
 0x1a0   : > { %v382_v41 = vadd.f32 %v381_v35, %v380_v39 }
 0x1a1   : > { %v388_v42 = vadd.f32 %v387_v38, %v386_v40 }
 0x1a2   : > { %383 = vst.msk [vmem:[%s257_s11] sm:$0xff] %vm267_vm0, %v382_v41 }
 0x1a3   : > { %720 = shalt.err (!%p717_p0)
}
 0x1a4   : > { %573 = dma.vmem_to_hbm [thread:$0]  (%p872_p11), %s409_s13, 128, %s411_s10, %s391_s12   ;;  %389 = vst.msk [vmem:[%s264_s30] sm:$0xff] %vm267_vm0, %v388_v42 }
 0x1a5   : > { %s396_s6 = scalar_lea.sflag [#allocation9], %s936_s29  ;;  %s735_s7 = sshra.s32 %s990_s0, 4  ;;  %s736_s7 = int_to_ptr.hbm [resolvable:$true] %s735_s7 }
 0x1a6   : > { %s737_s9 = scalar_lea.hbm %s736_s7, 8  ;;  %s741_s8 = scalar_lea.hbm %s1042_s4, 16 }
 0x1a7   : > { %p738_p1 = scmp.ne.s32.totalorder %s736_s7, %s737_s9  ;;  %p742_p5 = scmp.lt.s32.totalorder %s736_s7, %s1042_s4 }
 0x1a8   : > { %p743_p8 = scmp.lt.s32.totalorder %s741_s8, %s737_s9 }
 0x1a9   : > { %p739_p4 = pnand %p738_p1, %p872_p11 }
 0x1aa   : > { %p744_p6 = por %p743_p8, %p742_p5 }
 0x1ab   : > { %p740_p7 = pneg %p739_p4 }
 0x1ad   : > { %p745_p13 = pnand %p744_p6, %p740_p7 }
 0x1af   : > { %748 = shalt.err (!%p745_p13)
}
 0x1b0   : > { %574 = dma.vmem_to_hbm [thread:$0]  (%p872_p11), %s423_s22, 128, %s990_s0, %s396_s6  }
 0x1b1 PF: > { %s436_s29 = sand.u32 1, %s783_s15   ;;  %p1051_p3 = scmp.ge.s32.totalorder %s795_s18, 2 }
 0x1b2   : > { %s437_s13 = scalar_lea.sflag [#allocation4], %s436_s29 }
 0x1b3   : > { %p585_p10 = pnand %p1051_p3, %p876_p12 }
 0x1b5   : > { %p586_p2 = pneg %p585_p10 }
 0x1b7   : > { %774 = dma.done.wait (%p586_p2), %s437_s13, 128  }
 0x1b8   : > { %776 = vsyncadd (%p586_p2), %s437_s13, 4294967168  ;;  %s447_s10 = scalar_lea.sflag [#allocation9], %s436_s29 }
 0x1b9   : > { %778 = dma.done.wait (%p586_p2), %s447_s10, 128  }
 0x1ba   : > { %780 = vsyncadd (%p586_p2), %s447_s10, 4294967168  ;;  %p24_p11 = scmp.ge.s32.totalorder %s847_s21, 4   ;;  %s1052_s15 = smov %s787_s16 }
 0x1bb   : > { %s1053_s16 = smov %s791_s17  ;;  %s1054_s17 = smov %s859_s24 }
 0x1bc   : > { %s1055_s18 = smov %s847_s21  ;;  %26 = sbr.rel (!%p24_p11) target bundleno = 11 (0xb), region = 107 }
 0x1c1   :  { %453 = vsyncpa [#allocation3], 1 }
 0x1c2   :  { %455 = vsyncpa [#allocation3 + $0x1], 1 }
 0x1c3   :  { %456 = vsyncpa [#allocation6], 1 }
 0x1c4   :  { %458 = vsyncpa [#allocation6 + $0x1], 1 }
 0x1c5   :  { %459 = vsyncpa [#allocation4], 1 }
 0x1c6   :  { %461 = vsyncpa [#allocation4 + $0x1], 1 }
 0x1c7   :  { %462 = vsyncpa [#allocation9], 1 }
 0x1c8   :  { %464 = vsyncpa [#allocation9 + $0x1], 1 }

</bundles_post_ra>
